<compile_context>
chip_gen: v6e
topology: v6e:2x2x1
jax: 0.10.0
libtpu: 0.0.40
codegen_flags: <defaults>
</compile_context>

<pallas_src>
import functools
import math

import jax
import jax.numpy as jnp
from jax.experimental import pallas as pl
from jax.experimental.pallas import tpu as pltpu

P_DROP = 0.1
# Drop iff uniform uint32 bits < threshold:  P(drop) = threshold / 2**32 = 0.1.
_DROP_THRESHOLD_U32 = int(round(P_DROP * (1 << 32)))  # 429496730, fits in u32
_KEEP_SCALE = 1.0 / (1.0 - P_DROP)


def _pos_enc_kernel(seed_ref, x_ref, pe_ref, o_ref, *, training):
    # x_ref / o_ref: (tile_s, B, D) in the caller's dtype.
    # pe_ref:        (tile_s, 1, D) float32 -> broadcasts over batch in-register.
    y = x_ref[...].astype(jnp.float32) + pe_ref[...]

    if training:
        # Inverted dropout, p = 0.1 (torch.nn.Dropout training semantics; RNG
        # stream necessarily differs from torch's).
        pltpu.prng_seed(seed_ref[0], pl.program_id(0))
        bits = pltpu.prng_random_bits(y.shape)
        if bits.dtype != jnp.uint32:
            # Reinterpret, don't convert: keeps the per-element path to
            # prng + cmp + mul + select (matters on v7x's 3.2 TB/s roofline).
            bits = pltpu.bitcast(bits, jnp.uint32)
        keep = bits >= jnp.uint32(_DROP_THRESHOLD_U32)  # P(keep) = 1 - P_DROP
        y = jnp.where(keep, y * jnp.float32(_KEEP_SCALE), jnp.float32(0.0))

    o_ref[...] = y.astype(o_ref.dtype)


def make_pe_buffer(d_model, max_len=6000):
    """Deterministic positional-encoding buffer, shape (max_len, 1, d_model)."""
    position = jnp.arange(max_len, dtype=jnp.float32)[:, None]
    div_term = jnp.exp(
        jnp.arange(0, d_model, 2, dtype=jnp.float32) * (-math.log(10000.0) / d_model)
    )
    pe = jnp.zeros((max_len, d_model), jnp.float32)
    pe = pe.at[:, 0::2].set(jnp.sin(position * div_term))
    pe = pe.at[:, 1::2].set(jnp.cos(position * div_term))
    return pe[:, None, :]  # (max_len, 1, d_model)


def positional_encoding_forward(
    x,
    pe,
    *,
    seed=0,
    training=False,
    target_block_bytes=4 * 1024 * 1024,   # v7x-safe; bump to ~16 MiB on v5e/v6e
    vmem_limit_bytes=48 * 1024 * 1024,    # < 64 MiB v7x; bump to ~96 MiB on v5e/v6e
):
    """x: (S, B, D).  pe: (max_len, 1, D) buffer (float32).  Returns (S, B, D)."""
    S, B, D = x.shape
    assert pe.ndim == 3 and pe.shape[1] == 1 and pe.shape[2] == D
    assert pe.shape[0] >= S, "pe buffer shorter than sequence length"
    if pe.dtype != jnp.float32:
        pe = pe.astype(jnp.float32)

    # --- tile over the sequence axis only -------------------------------
    bytes_per_row = B * D * x.dtype.itemsize          # one sequence step of x
    tile_s = max(1, min(S, target_block_bytes // max(1, bytes_per_row)))
    # Make sure big problems have >= 4 grid steps so the "parallel" axis can
    # actually be sharded across v7x's two TensorCores.
    if S * bytes_per_row > 2 * target_block_bytes and pl.cdiv(S, tile_s) < 4:
        tile_s = max(1, pl.cdiv(S, 4))
    grid = (pl.cdiv(S, tile_s),)

    kernel = functools.partial(_pos_enc_kernel, training=training)

    # NOTE: if D is not a multiple of 128 the vector stores are lane-masked;
    # acceptable for a mem-bound elementwise op, and it avoids any repack pass.
    return pl.pallas_call(
        kernel,
        out_shape=jax.ShapeDtypeStruct((S, B, D), x.dtype),
        grid_spec=pltpu.PrefetchScalarGridSpec(
            num_scalar_prefetch=1,  # seed -> SMEM
            grid=grid,
            in_specs=[
                pl.BlockSpec((tile_s, B, D), lambda i, s_ref: (i, 0, 0)),
                pl.BlockSpec((tile_s, 1, D), lambda i, s_ref: (i, 0, 0)),
            ],
            out_specs=pl.BlockSpec((tile_s, B, D), lambda i, s_ref: (i, 0, 0)),
        ),
        compiler_params=pltpu.CompilerParams(
            dimension_semantics=("parallel",),
            vmem_limit_bytes=vmem_limit_bytes,
        ),
        # Inputs are (seed, x, pe) -> x is arg index 1; donate it to output 0.
        input_output_aliases={1: 0},
    )(jnp.asarray([seed], jnp.int32), x, pe)


if __name__ == "__main__":
    # Small shapes consistent with the module: seq=8, batch=2, d_model=32.
    S, B, D = 8, 2, 32
    key = jax.random.PRNGKey(0)
    x = jax.random.normal(key, (S, B, D), dtype=jnp.float32)
    pe = make_pe_buffer(D, max_len=6000)

    ref = x + pe[:S]  # (S,1,D) broadcasts over batch

    # Eval mode (dropout == identity): deterministic, compare vs reference.
    out_eval = jax.block_until_ready(
        positional_encoding_forward(x, pe, training=False)
    )
    assert out_eval.shape == (S, B, D)
    assert jnp.allclose(out_eval, ref, atol=1e-5, rtol=1e-5), "mismatch vs reference"

    # Training mode exercises the in-kernel hardware PRNG; the prng_seed /
    # prng_random_bits primitives only lower on a real TPU backend.
    if jax.default_backend() == "tpu":
        out_train = jax.block_until_ready(
            positional_encoding_forward(x, pe, seed=123, training=True)
        )
        assert out_train.shape == (S, B, D)
        kept = out_train != 0.0
        # Every kept element equals ref / (1 - p); dropped elements are 0.
        assert jnp.allclose(
            jnp.where(kept, out_train * (1.0 - P_DROP), 0.0),
            jnp.where(kept, ref, 0.0),
            atol=1e-5,
            rtol=1e-5,
        ), "dropout scaling mismatch"
        drop_frac = 1.0 - jnp.mean(kept.astype(jnp.float32))
        assert drop_frac < 0.5, f"implausible drop fraction {drop_frac}"

    print("KERNEL_OK")
</pallas_src>

<mosaic_0001>
module attributes {stable_mosaic.version = 11 : i64} {
  func.func @_pos_enc_kernel(%arg0: i32, %arg1: memref<1xi32, #tpu.memory_space<smem>>, %arg2: memref<8x2x32xf32, #tpu.memory_space<vmem>>, %arg3: memref<8x1x32xf32, #tpu.memory_space<vmem>>, %arg4: memref<8x2x32xf32, #tpu.memory_space<vmem>>) attributes {dimension_semantics = [#tpu.dimension_semantics<parallel>], iteration_bounds = array<i64: 1>, scalar_prefetch = 1 : i64, scratch_operands = 0 : i64, tpu.core_type = #tpu.core_type<tc>, window_params = [{transform_indices = @transform_0, window_bounds = array<i64: 8, 2, 32>}, {transform_indices = @transform_1, window_bounds = array<i64: 8, 1, 32>}, {transform_indices = @transform_2, window_bounds = array<i64: 8, 2, 32>}]} {
    %c0 = arith.constant 0 : index
    %c0_0 = arith.constant 0 : index
    %c0_1 = arith.constant 0 : index
    %0 = vector.load %arg2[%c0, %c0_0, %c0_1] : memref<8x2x32xf32, #tpu.memory_space<vmem>>, vector<8x2x32xf32>
    %c0_2 = arith.constant 0 : index
    %c0_3 = arith.constant 0 : index
    %c0_4 = arith.constant 0 : index
    %1 = vector.load %arg3[%c0_2, %c0_3, %c0_4] : memref<8x1x32xf32, #tpu.memory_space<vmem>>, vector<8x1x32xf32>
    %2 = vector.broadcast %1 : vector<8x1x32xf32> to vector<8x2x32xf32>
    %3 = arith.addf %0, %2 : vector<8x2x32xf32>
    %c0_5 = arith.constant 0 : index
    %c0_6 = arith.constant 0 : index
    %c0_7 = arith.constant 0 : index
    %4 = vector.load %arg4[%c0_5, %c0_6, %c0_7] : memref<8x2x32xf32, #tpu.memory_space<vmem>>, vector<8x2x32xf32>
    tpu.vector_store %arg4[%c0_5, %c0_6, %c0_7], %3 {strides = array<i32>} : memref<8x2x32xf32, #tpu.memory_space<vmem>>, vector<8x2x32xf32>,
    return
  }
  func.func @transform_0(%arg0: i32, %arg1: memref<1xi32, #tpu.memory_space<smem>>) -> (i32, i32, i32) {
    %c0_i32 = arith.constant 0 : i32
    %c0_i32_0 = arith.constant 0 : i32
    %c0_i32_1 = arith.constant 0 : i32
    return %arg0, %c0_i32, %c0_i32_0 : i32, i32, i32
  }
  func.func @transform_1(%arg0: i32, %arg1: memref<1xi32, #tpu.memory_space<smem>>) -> (i32, i32, i32) {
    %c0_i32 = arith.constant 0 : i32
    %c0_i32_0 = arith.constant 0 : i32
    %c0_i32_1 = arith.constant 0 : i32
    return %arg0, %c0_i32, %c0_i32_0 : i32, i32, i32
  }
  func.func @transform_2(%arg0: i32, %arg1: memref<1xi32, #tpu.memory_space<smem>>) -> (i32, i32, i32) {
    %c0_i32 = arith.constant 0 : i32
    %c0_i32_0 = arith.constant 0 : i32
    %c0_i32_1 = arith.constant 0 : i32
    return %arg0, %c0_i32, %c0_i32_0 : i32, i32, i32
  }
}

</mosaic_0001>

<bundles_post_ra>
// kernel: tpu_custom_call.1
= control target key start
LH: loop header
LB: loop body
LE: loop exit
PB: predicated region body
PF: predicated region fallthrough
CT: control target
= control target key end

     0   :  { %9 = vsyncpa [#allocation5], 0  ;;  %s253_s0 = inlined_call_operand.<no memory space> [shape: s32[1], index: 0, kind: input, shape index: {}]   ;;  %s254_s1 = inlined_call_operand.hbm [shape: f32[8,2,32], index: 1, kind: input, shape index: {}, may-alias: {1,3}]   ;;  %s255_s2 = inlined_call_operand.vmem [shape: f32[6000,1,32], index: 2, kind: input, shape index: {}]   ;;  %s256_s3 = inlined_call_operand.hbm [shape: f32[8,2,32], index: 3, kind: output, shape index: {}, may-alias: {1,3}]  }
   0x1   :  { %10 = vsyncpa [#allocation6], 0  ;;  %s182_s12 = smov [#allocation4]  }
   0x2   :  { %s16_s13 = sshll.u32 %s182_s12, 4  ;;  %s17_s13 = int_to_ptr.vmem [resolvable:$true] %s16_s13 }
   0x3   :  { %s146_s14 = scalar_lea.vmem %s17_s13, 256  ;;  %p151_p1 = scmp.lt.s32.totalorder %s17_s13, %s17_s13 }
   0x4   :  { %p147_p0 = scmp.ne.s32.totalorder %s17_s13, %s146_s14  ;;  %p152_p2 = scmp.lt.s32.totalorder %s146_s14, %s146_s14 }
   0x6   :  { %p153_p3 = por %p152_p2, %p151_p1 }
   0x8   :  { %p154_p4 = pnand %p153_p3, %p147_p0 }
   0xa   :  { %157 = shalt.err (!%p154_p4)
}
   0xb   :  { %s183_s0 = smov 32   ;;  %s184_s15 = smov 2  }
   0xc   :  { %22 = dma.hbm_to_vmem [thread:$0]  %s254_s1, 256, %s17_s13, [#allocation5], %s183_s0, %s183_s0, %s184_s15  }
   0xd   :  { %178 = dma.done.wait [#allocation5], 256  }
   0xe   :  { %179 = vsyncadd [#allocation5], 4294967040  ;;  %vm100_vm0 = vcmask 254976   ;;  %s185_s18 = smov [#allocation7]   ;;  %v28_v0 = vld [vmem:[#allocation4] sm:$0x3] }
   0xf   :  { %s212_s19 = sshll.u32 %s185_s18, 4  ;;  %v126_v1 = vld [vmem:[%s255_s2] ss:$0 sm:$0xff]  ;;  %v29_v2 = vld [vmem:[#allocation4 + $0x2] sm:$0x3]  ;;  %s115_s19 = int_to_ptr.vmem [resolvable:$true] %s212_s19 }
  0x10   :  { %v92_v3 = vadd.f32 %v126_v1, %v28_v0  ;;  %v127_v4 = vld [vmem:[%s255_s2 + $0x1] ss:$0 sm:$0xff]  ;;  %v30_v5 = vld [vmem:[#allocation4 + $0x4] sm:$0x3]  ;;  %v128_v6 = vld [vmem:[%s255_s2 + $0x2] ss:$0 sm:$0xff]  ;;  %p163_p6 = scmp.lt.s32.totalorder %s115_s19, %s115_s19 }
  0x11   :  { %v93_v7 = vadd.f32 %v127_v4, %v29_v2  ;;  %v94_v8 = vadd.f32 %v128_v6, %v30_v5  ;;  %v31_v9 = vld [vmem:[#allocation4 + $0x6] sm:$0x3]  ;;  %v129_v10 = vld [vmem:[%s255_s2 + $0x3] ss:$0 sm:$0xff]  ;;  %v32_v11 = vld [vmem:[#allocation4 + $0x8] sm:$0x3] }
  0x12   :  { %101 = vst.msk [vmem:[#allocation7] sm:$0x3] %vm100_vm0, %v92_v3  ;;  %v95_v12 = vadd.f32 %v129_v10, %v31_v9  ;;  %v130_v13 = vld [vmem:[%s255_s2 + $0x4] ss:$0 sm:$0xff]  ;;  %v33_v14 = vld [vmem:[#allocation4 + $0xa] sm:$0x3] }
  0x13   :  { %v131_v15 = vld [vmem:[%s255_s2 + $0x5] ss:$0 sm:$0xff]  ;;  %102 = vst.msk [vmem:[#allocation7 + $0x2] sm:$0x3] %vm100_vm0, %v93_v7  ;;  %103 = vst.msk [vmem:[#allocation7 + $0x4] sm:$0x3] %vm100_vm0, %v94_v8  ;;  %v96_v16 = vadd.f32 %v130_v13, %v32_v11 }
  0x14   :  { %v97_v17 = vadd.f32 %v131_v15, %v33_v14  ;;  %v34_v18 = vld [vmem:[#allocation4 + $0xc] sm:$0x3]  ;;  %v132_v19 = vld [vmem:[%s255_s2 + $0x6] ss:$0 sm:$0xff]  ;;  %v35_v20 = vld [vmem:[#allocation4 + $0xe] sm:$0x3] }
  0x15   :  { %104 = vst.msk [vmem:[#allocation7 + $0x6] sm:$0x3] %vm100_vm0, %v95_v12  ;;  %v98_v21 = vadd.f32 %v132_v19, %v34_v18  ;;  %v133_v22 = vld [vmem:[%s255_s2 + $0x7] ss:$0 sm:$0xff]  ;;  %105 = vst.msk [vmem:[#allocation7 + $0x8] sm:$0x3] %vm100_vm0, %v96_v16 }
  0x16   :  { %106 = vst.msk [vmem:[#allocation7 + $0xa] sm:$0x3] %vm100_vm0, %v97_v17  ;;  %v99_v23 = vadd.f32 %v133_v22, %v35_v20  ;;  %s158_s8 = scalar_lea.vmem %s115_s19, 256 }
  0x17   :  { %107 = vst.msk [vmem:[#allocation7 + $0xc] sm:$0x3] %vm100_vm0, %v98_v21  ;;  %p159_p5 = scmp.ne.s32.totalorder %s115_s19, %s158_s8  ;;  %p164_p7 = scmp.lt.s32.totalorder %s158_s8, %s158_s8 }
  0x18   :  { %108 = vst.msk [vmem:[#allocation7 + $0xe] sm:$0x3] %vm100_vm0, %v99_v23 }
  0x19   :  { %p165_p8 = por %p164_p7, %p163_p6 }
  0x1b   :  { %p166_p9 = pnand %p165_p8, %p159_p5 }
  0x1d   :  { %169 = shalt.err (!%p166_p9)
}
  0x1e   :  { %120 = dma.vmem_to_hbm [thread:$0]  %s115_s19, 256, %s256_s3, [#allocation6], %s183_s0, %s183_s0, %s184_s15  }
  0x1f   :  { %180 = dma.done.wait [#allocation6], 256  }
  0x20   :  { %181 = vsyncadd [#allocation6], 4294967040 }
  0x21   :  { %124 = vsyncpa [#allocation5], 1 }
  0x22   :  { %125 = vsyncpa [#allocation6], 1 }

</bundles_post_ra>
